<compile_context>
chip_gen: v7x
topology: tpu7x:2x2x1
jax: 0.10.0
libtpu: 0.0.40
codegen_flags: <defaults>
</compile_context>

<pallas_src>
import functools

import jax
import jax.numpy as jnp
from jax.experimental import pallas as pl
from jax.experimental.pallas import tpu as pltpu


def _round_up(x, m):
    return (x + m - 1) // m * m


def attn_block_kernel(x_ref, wqkv_ref, bqkv_ref, wp_ref, bp_ref, o_ref,
                      qkv_sc, *, tq, cp, l_real, l_pad):
    """Grid step (b, t): query tile t of batch element b.

    x_ref:    (1, L_pad, Cp)  fp32   all tokens of this batch element
    wqkv_ref: (Cp, 3*Cp)      bf16   BN-affine + score-scale folded, pre-transposed
    bqkv_ref: (1, 3*Cp)       fp32
    wp_ref:   (Cp, Cp)        bf16   pre-transposed proj_out weight
    bp_ref:   (1, Cp)         fp32
    o_ref:    (1, TQ, Cp)     fp32
    qkv_sc:   (L_pad, 3*Cp)   bf16   VMEM scratch, resident across query tiles
    """
    t = pl.program_id(1)

    # Fused QKV projection over all tokens, once per batch element.
    @pl.when(t == 0)
    def _():
        x_all = x_ref[0].astype(jnp.bfloat16)                       # (L_pad, Cp)
        qkv = jnp.dot(x_all, wqkv_ref[...],
                      preferred_element_type=jnp.float32)
        qkv = qkv + bqkv_ref[...]
        qkv_sc[...] = qkv.astype(jnp.bfloat16)                      # (L_pad, 3*Cp)

    row0 = pl.multiple_of(t * tq, tq)
    q = qkv_sc[pl.ds(row0, tq), pl.ds(0, cp)]       # (TQ, Cp)   bf16 (pre-scaled by C**-0.5)
    k = qkv_sc[:, pl.ds(cp, cp)]                    # (L_pad, Cp) bf16
    v = qkv_sc[:, pl.ds(2 * cp, cp)]                # (L_pad, Cp) bf16

    # scores[i, j] = sum_c q[i, c] * k[j, c]   (contraction, no in-kernel transpose)
    s = jax.lax.dot_general(q, k, (((1,), (1,)), ((), ())),
                            preferred_element_type=jnp.float32)     # (TQ, L_pad)
    if l_pad != l_real:                                             # static: mask padded keys
        key_idx = jax.lax.broadcasted_iota(jnp.int32, s.shape, 1)
        s = jnp.where(key_idx < l_real, s, -1e30)

    # softmax over the key axis (fp32); divide via EUP approx reciprocal
    s = s - jnp.max(s, axis=-1, keepdims=True)
    e = jnp.exp(s)
    p = e * pl.reciprocal(jnp.sum(e, axis=-1, keepdims=True), approx=True)

    h = jnp.dot(p.astype(jnp.bfloat16), v,
                preferred_element_type=jnp.float32)                 # (TQ, Cp)
    out = jnp.dot(h.astype(jnp.bfloat16), wp_ref[...],
                  preferred_element_type=jnp.float32) + bp_ref[...]

    x_tile = x_ref[0, pl.ds(row0, tq), :]                           # (TQ, Cp) fp32 residual
    o_ref[0] = (x_tile + out).astype(o_ref.dtype)


def attn_block_1d(x_bcl, params, eps=1e-5, tq_target=256):
    """AttnBlock1D forward.  x_bcl: (B, C, L) in the PyTorch NCL layout."""
    B, C, L = x_bcl.shape
    x32 = x_bcl.astype(jnp.float32)

    # BatchNorm1d (training-mode batch stats over (N, L), biased variance).
    # TODO(synk): this tiny cross-batch reduction stays in plain XLA; its
    # affine result is folded into the fused QKV weights below.
    mean = jnp.mean(x32, axis=(0, 2))
    var = jnp.mean(jnp.square(x32 - mean[None, :, None]), axis=(0, 2))
    inv_std = 1.0 / jnp.sqrt(var + eps)
    bn_s = params["bn_gamma"] * inv_std                 # per-channel scale
    bn_t = params["bn_beta"] - mean * bn_s              # per-channel shift

    c_scale = float(int(C)) ** (-0.5)

    def fold(w, b, extra=1.0):
        # conv1x1 in token layout is xn @ w.T + b; fold xn = x*bn_s + bn_t and
        # an optional scalar (the attention score scale) into weight/bias.
        wt = w.T * extra                                 # (Cin, Cout)
        return wt * bn_s[:, None], bn_t @ wt + b * extra

    wq_f, bq_f = fold(params["wq"], params["bq"], c_scale)
    wk_f, bk_f = fold(params["wk"], params["bk"])
    wv_f, bv_f = fold(params["wv"], params["bv"])
    wp_f = params["wp"].T                                # pre-transposed
    bp_f = params["bp"]

    # Pad channels to the 128-lane width; pad tokens to a multiple of TQ.
    Cp = max(128, _round_up(C, 128))
    TQ = min(tq_target, _round_up(L, 8))
    L_pad = _round_up(L, TQ)
    n_t = L_pad // TQ

    def pad_w(w):
        return jnp.zeros((Cp, Cp), jnp.float32).at[:C, :C].set(w)

    def pad_b(b):
        return jnp.zeros((Cp,), jnp.float32).at[:C].set(b)

    wqkv = jnp.concatenate([pad_w(wq_f), pad_w(wk_f), pad_w(wv_f)],
                           axis=1).astype(jnp.bfloat16)              # (Cp, 3Cp)
    bqkv = jnp.concatenate([pad_b(bq_f), pad_b(bk_f), pad_b(bv_f)]
                           ).reshape(1, 3 * Cp)                      # fp32
    wp = pad_w(wp_f).astype(jnp.bfloat16)                            # (Cp, Cp)
    bp = pad_b(bp_f).reshape(1, Cp)                                  # fp32

    x_tok = jnp.transpose(x32, (0, 2, 1))                            # (B, L, C)
    x_pad = jnp.zeros((B, L_pad, Cp), jnp.float32).at[:, :L, :C].set(x_tok)

    kernel = functools.partial(attn_block_kernel, tq=TQ, cp=Cp,
                               l_real=L, l_pad=L_pad)

    # VMEM budget (bytes); inputs/outputs are double-buffered by the pipeliner.
    est = (2 * L_pad * Cp * 4                 # x block
           + 2 * TQ * Cp * 4                  # out block
           + 2 * (3 * Cp * Cp + Cp * Cp) * 2  # bf16 weights
           + 2 * 4 * Cp * 4                   # biases
           + L_pad * 3 * Cp * 2               # qkv scratch (bf16)
           + L_pad * 3 * Cp * 4               # qkv fp32 temporary at t == 0
           + 4 * TQ * L_pad * 4               # score / softmax temporaries
           + 4 * TQ * Cp * 4)                 # h / proj temporaries
    vmem_limit = int(min(max(2 * est, 32 * 2**20), 64 * 2**20))      # 64 MiB cap (v7x physical)

    full = lambda shape: pl.BlockSpec(shape, lambda b, t: (0, 0))

    out = pl.pallas_call(
        kernel,
        out_shape=jax.ShapeDtypeStruct((B, L_pad, Cp), jnp.float32),
        grid_spec=pltpu.PrefetchScalarGridSpec(
            num_scalar_prefetch=0,
            grid=(B, n_t),
            in_specs=[
                pl.BlockSpec((1, L_pad, Cp), lambda b, t: (b, 0, 0)),  # x (all tokens, this batch)
                full((Cp, 3 * Cp)),                                    # wqkv
                full((1, 3 * Cp)),                                     # bqkv
                full((Cp, Cp)),                                        # wp
                full((1, Cp)),                                         # bp
            ],
            out_specs=pl.BlockSpec((1, TQ, Cp), lambda b, t: (b, t, 0)),
            scratch_shapes=[pltpu.VMEM((L_pad, 3 * Cp), jnp.bfloat16)],
        ),
        compiler_params=pltpu.CompilerParams(
            # query-tile axis must iterate sequentially: the QKV scratch is
            # filled at t == 0 and reused by the following tiles of the batch.
            dimension_semantics=("parallel", "arbitrary"),
            vmem_limit_bytes=vmem_limit,
        ),
    )(x_pad, wqkv, bqkv, wp, bp)

    out = out[:, :L, :C]                                             # drop padding
    return jnp.transpose(out, (0, 2, 1))                             # back to (B, C, L)


def init_params(key, C):
    """Deterministic init mirroring PyTorch defaults (uniform +-1/sqrt(fan_in))."""
    ks = jax.random.split(key, 8)
    bound = 1.0 / jnp.sqrt(jnp.float32(C))
    u = lambda k, shape: jax.random.uniform(k, shape, jnp.float32, -bound, bound)
    return {
        "bn_gamma": jnp.ones((C,), jnp.float32),
        "bn_beta": jnp.zeros((C,), jnp.float32),
        "wq": u(ks[0], (C, C)), "bq": u(ks[1], (C,)),
        "wk": u(ks[2], (C, C)), "bk": u(ks[3], (C,)),
        "wv": u(ks[4], (C, C)), "bv": u(ks[5], (C,)),
        "wp": u(ks[6], (C, C)), "bp": u(ks[7], (C,)),
    }


def reference(x_bcl, params, eps=1e-5):
    """Pure-JAX fp32 reference reproducing the PyTorch forward."""
    B, C, L = x_bcl.shape
    x = x_bcl.astype(jnp.float32)
    mean = jnp.mean(x, axis=(0, 2), keepdims=True)
    var = jnp.mean(jnp.square(x - mean), axis=(0, 2), keepdims=True)
    hn = (x - mean) / jnp.sqrt(var + eps)
    hn = hn * params["bn_gamma"][None, :, None] + params["bn_beta"][None, :, None]

    def conv1x1(t, w, b):                     # t: (B, C, L), w: (Cout, Cin)
        return jnp.einsum("oc,bcl->bol", w, t) + b[None, :, None]

    q = conv1x1(hn, params["wq"], params["bq"])       # (B, C, L)
    k = conv1x1(hn, params["wk"], params["bk"])
    v = conv1x1(hn, params["wv"], params["bv"])
    qt = jnp.transpose(q, (0, 2, 1))                  # (B, L, C)
    w_ = jnp.einsum("bic,bcj->bij", qt, k) * (int(C) ** (-0.5))
    w_ = jax.nn.softmax(w_, axis=2)
    h_ = jnp.einsum("bcj,bij->bci", v, w_)            # (B, C, L)
    h_ = conv1x1(h_, params["wp"], params["bp"])
    return x + h_


if __name__ == "__main__":
    B, C, L = 2, 4, 16
    key = jax.random.PRNGKey(0)
    kx, kp = jax.random.split(key)
    x = jax.random.normal(kx, (B, C, L), jnp.float32)
    params = init_params(kp, C)

    y = attn_block_1d(x, params)
    y = jax.block_until_ready(y)

    y_ref = reference(x, params)
    assert y.shape == (B, C, L)
    max_err = float(jnp.max(jnp.abs(y - y_ref)))
    # bf16 MXU operands with fp32 accumulation -> ~1e-2 scale tolerance
    assert jnp.allclose(y, y_ref, rtol=3e-2, atol=3e-2), max_err

    print("KERNEL_OK")
</pallas_src>

<mosaic_0001>
module attributes {stable_mosaic.version = 11 : i64} {
  func.func @attn_block_kernel(%arg0: i32, %arg1: i32, %arg2: memref<1x16x128xf32, #tpu.memory_space<vmem>>, %arg3: memref<128x384xbf16, #tpu.memory_space<vmem>>, %arg4: memref<1x384xf32, #tpu.memory_space<vmem>>, %arg5: memref<128x128xbf16, #tpu.memory_space<vmem>>, %arg6: memref<1x128xf32, #tpu.memory_space<vmem>>, %arg7: memref<1x16x128xf32, #tpu.memory_space<vmem>>, %arg8: memref<16x384xbf16, #tpu.memory_space<vmem>>) attributes {dimension_semantics = [#tpu.dimension_semantics<parallel>, #tpu.dimension_semantics<arbitrary>], iteration_bounds = array<i64: 2, 1>, scalar_prefetch = 0 : i64, scratch_operands = 1 : i64, tpu.core_type = #tpu.core_type<tc>, window_params = [{transform_indices = @transform_0, window_bounds = array<i64: 1, 16, 128>}, {pipeline_mode = #tpu.pipeline_mode<synchronous>, transform_indices = @transform_1, window_bounds = array<i64: 128, 384>}, {pipeline_mode = #tpu.pipeline_mode<synchronous>, transform_indices = @transform_2, window_bounds = array<i64: 1, 384>}, {pipeline_mode = #tpu.pipeline_mode<synchronous>, transform_indices = @transform_3, window_bounds = array<i64: 128, 128>}, {pipeline_mode = #tpu.pipeline_mode<synchronous>, transform_indices = @transform_4, window_bounds = array<i64: 1, 128>}, {transform_indices = @transform_5, window_bounds = array<i64: 1, 16, 128>}]} {
    %c0_i32 = arith.constant 0 : i32
    %0 = arith.cmpi eq, %arg1, %c0_i32 : i32
    %1 = arith.extui %0 : i1 to i32
    %c0_i32_0 = arith.constant 0 : i32
    %2 = arith.cmpi ne, %1, %c0_i32_0 : i32
    scf.if %2 {
      %c0_16 = arith.constant 0 : index
      %c0_17 = arith.constant 0 : index
      %c0_18 = arith.constant 0 : index
      %35 = vector.load %arg2[%c0_16, %c0_17, %c0_18] : memref<1x16x128xf32, #tpu.memory_space<vmem>>, vector<1x16x128xf32>
      %36 = vector.shape_cast %35 : vector<1x16x128xf32> to vector<16x128xf32>
      %37 = arith.truncf %36 : vector<16x128xf32> to vector<16x128xbf16>
      %c0_19 = arith.constant 0 : index
      %c0_20 = arith.constant 0 : index
      %38 = vector.load %arg3[%c0_19, %c0_20] : memref<128x384xbf16, #tpu.memory_space<vmem>>, vector<128x384xbf16>
      %cst_21 = arith.constant dense<0.000000e+00> : vector<16x384xf32>
      %39 = tpu.matmul %37, %38, %cst_21 {dimension_numbers = #tpu.dot_dimension_numbers<[1], [0], [0], [1], [0, 0, 1, 1], [], []>} : vector<16x128xbf16>, vector<128x384xbf16>, vector<16x384xf32> -> vector<16x384xf32>
      %c0_22 = arith.constant 0 : index
      %c0_23 = arith.constant 0 : index
      %40 = vector.load %arg4[%c0_22, %c0_23] : memref<1x384xf32, #tpu.memory_space<vmem>>, vector<1x384xf32>
      %41 = vector.broadcast %40 : vector<1x384xf32> to vector<16x384xf32>
      %42 = arith.addf %39, %41 : vector<16x384xf32>
      %43 = arith.truncf %42 : vector<16x384xf32> to vector<16x384xbf16>
      %c0_24 = arith.constant 0 : index
      %c0_25 = arith.constant 0 : index
      %44 = vector.load %arg8[%c0_24, %c0_25] : memref<16x384xbf16, #tpu.memory_space<vmem>>, vector<16x384xbf16>
      tpu.vector_store %arg8[%c0_24, %c0_25], %43 {strides = array<i32>} : memref<16x384xbf16, #tpu.memory_space<vmem>>, vector<16x384xbf16>,
    } else {
    }
    %c16_i32 = arith.constant 16 : i32
    %3 = arith.muli %arg1, %c16_i32 : i32
    %4 = tpu.assume_multiple %3, 16 : i32
    %5 = arith.index_cast %4 : i32 to index
    %c0 = arith.constant 0 : index
    %6 = vector.load %arg8[%5, %c0] : memref<16x384xbf16, #tpu.memory_space<vmem>>, vector<16x128xbf16>
    %c0_1 = arith.constant 0 : index
    %c128 = arith.constant 128 : index
    %7 = vector.load %arg8[%c0_1, %c128] : memref<16x384xbf16, #tpu.memory_space<vmem>>, vector<16x128xbf16>
    %c0_2 = arith.constant 0 : index
    %c256 = arith.constant 256 : index
    %8 = vector.load %arg8[%c0_2, %c256] : memref<16x384xbf16, #tpu.memory_space<vmem>>, vector<16x128xbf16>
    %cst = arith.constant dense<0.000000e+00> : vector<16x16xf32>
    %9 = tpu.matmul %6, %7, %cst {dimension_numbers = #tpu.dot_dimension_numbers<[1], [1], [0], [0], [0, 0, 1, 0], [], []>} : vector<16x128xbf16>, vector<16x128xbf16>, vector<16x16xf32> -> vector<16x16xf32>
    %cst_3 = arith.constant dense<0xFF800000> : vector<16xf32>
    %10 = vector.multi_reduction <maximumf>, %9, %cst_3 [1] : vector<16x16xf32> to vector<16xf32>
    %11 = vector.shape_cast %10 : vector<16xf32> to vector<16x1xf32>
    %12 = vector.broadcast %11 : vector<16x1xf32> to vector<16x16xf32>
    %13 = arith.subf %9, %12 : vector<16x16xf32>
    %14 = math.exp %13 : vector<16x16xf32>
    %cst_4 = arith.constant dense<0.000000e+00> : vector<16xf32>
    %15 = vector.multi_reduction <add>, %14, %cst_4 [1] : vector<16x16xf32> to vector<16xf32>
    %16 = vector.shape_cast %15 : vector<16xf32> to vector<16x1xf32>
    %17 = tpu.reciprocal %16 {approx = true} : vector<16x1xf32> -> vector<16x1xf32>
    %18 = vector.broadcast %17 : vector<16x1xf32> to vector<16x16xf32>
    %19 = arith.mulf %14, %18 : vector<16x16xf32>
    %20 = arith.truncf %19 : vector<16x16xf32> to vector<16x16xbf16>
    %cst_5 = arith.constant dense<0.000000e+00> : vector<16x128xf32>
    %21 = tpu.matmul %20, %8, %cst_5 {dimension_numbers = #tpu.dot_dimension_numbers<[1], [0], [0], [1], [0, 0, 1, 1], [], []>} : vector<16x16xbf16>, vector<16x128xbf16>, vector<16x128xf32> -> vector<16x128xf32>
    %22 = arith.truncf %21 : vector<16x128xf32> to vector<16x128xbf16>
    %c0_6 = arith.constant 0 : index
    %c0_7 = arith.constant 0 : index
    %23 = vector.load %arg5[%c0_6, %c0_7] : memref<128x128xbf16, #tpu.memory_space<vmem>>, vector<128x128xbf16>
    %cst_8 = arith.constant dense<0.000000e+00> : vector<16x128xf32>
    %24 = tpu.matmul %22, %23, %cst_8 {dimension_numbers = #tpu.dot_dimension_numbers<[1], [0], [0], [1], [0, 0, 1, 1], [], []>} : vector<16x128xbf16>, vector<128x128xbf16>, vector<16x128xf32> -> vector<16x128xf32>
    %c0_9 = arith.constant 0 : index
    %c0_10 = arith.constant 0 : index
    %25 = vector.load %arg6[%c0_9, %c0_10] : memref<1x128xf32, #tpu.memory_space<vmem>>, vector<1x128xf32>
    %26 = vector.broadcast %25 : vector<1x128xf32> to vector<16x128xf32>
    %27 = arith.addf %24, %26 : vector<16x128xf32>
    %c0_11 = arith.constant 0 : index
    %28 = arith.index_cast %4 : i32 to index
    %c0_12 = arith.constant 0 : index
    %29 = vector.load %arg2[%c0_11, %28, %c0_12] : memref<1x16x128xf32, #tpu.memory_space<vmem>>, vector<1x16x128xf32>
    %30 = vector.shape_cast %29 : vector<1x16x128xf32> to vector<16x128xf32>
    %31 = arith.addf %30, %27 : vector<16x128xf32>
    %c0_13 = arith.constant 0 : index
    %c0_14 = arith.constant 0 : index
    %c0_15 = arith.constant 0 : index
    %32 = vector.load %arg7[%c0_13, %c0_14, %c0_15] : memref<1x16x128xf32, #tpu.memory_space<vmem>>, vector<1x16x128xf32>
    %33 = vector.shape_cast %32 : vector<1x16x128xf32> to vector<16x128xf32>
    %34 = vector.shape_cast %31 : vector<16x128xf32> to vector<1x16x128xf32>
    tpu.vector_store %arg7[%c0_13, %c0_14, %c0_15], %34 {strides = array<i32>} : memref<1x16x128xf32, #tpu.memory_space<vmem>>, vector<1x16x128xf32>,
    return
  }
  func.func @transform_0(%arg0: i32, %arg1: i32) -> (i32, i32, i32) {
    %c0_i32 = arith.constant 0 : i32
    %c0_i32_0 = arith.constant 0 : i32
    %c0_i32_1 = arith.constant 0 : i32
    return %arg0, %c0_i32, %c0_i32_0 : i32, i32, i32
  }
  func.func @transform_1(%arg0: i32, %arg1: i32) -> (i32, i32) {
    %c0_i32 = arith.constant 0 : i32
    %c0_i32_0 = arith.constant 0 : i32
    %c0_i32_1 = arith.constant 0 : i32
    return %c0_i32, %c0_i32_0 : i32, i32
  }
  func.func @transform_2(%arg0: i32, %arg1: i32) -> (i32, i32) {
    %c0_i32 = arith.constant 0 : i32
    %c0_i32_0 = arith.constant 0 : i32
    %c0_i32_1 = arith.constant 0 : i32
    return %c0_i32, %c0_i32_0 : i32, i32
  }
  func.func @transform_3(%arg0: i32, %arg1: i32) -> (i32, i32) {
    %c0_i32 = arith.constant 0 : i32
    %c0_i32_0 = arith.constant 0 : i32
    %c0_i32_1 = arith.constant 0 : i32
    return %c0_i32, %c0_i32_0 : i32, i32
  }
  func.func @transform_4(%arg0: i32, %arg1: i32) -> (i32, i32) {
    %c0_i32 = arith.constant 0 : i32
    %c0_i32_0 = arith.constant 0 : i32
    %c0_i32_1 = arith.constant 0 : i32
    return %c0_i32, %c0_i32_0 : i32, i32
  }
  func.func @transform_5(%arg0: i32, %arg1: i32) -> (i32, i32, i32) {
    %c0_i32 = arith.constant 0 : i32
    %c0_i32_0 = arith.constant 0 : i32
    return %arg0, %arg1, %c0_i32 : i32, i32, i32
  }
}

</mosaic_0001>

<bundles_post_ra>
// kernel: tpu_custom_call.1
= control target key start
LH: loop header
LB: loop body
LE: loop exit
PB: predicated region body
PF: predicated region fallthrough
CT: control target
= control target key end

     0   :  { %10 = vsyncpa [#allocation4], 0  ;;  %s1721_s0 = inlined_call_operand.hbm [shape: f32[2,16,128], index: 0, kind: input, shape index: {}]   ;;  %s1722_s1 = inlined_call_operand.hbm [shape: bf16[128,384], index: 1, kind: input, shape index: {}]   ;;  %s1723_s2 = inlined_call_operand.vmem [shape: f32[1,384], index: 2, kind: input, shape index: {}]   ;;  %s1724_s3 = inlined_call_operand.hbm [shape: bf16[128,128], index: 3, kind: input, shape index: {}]   ;;  %s1725_s4 = inlined_call_operand.vmem [shape: f32[1,128], index: 4, kind: input, shape index: {}]   ;;  %s1726_s5 = inlined_call_operand.hbm [shape: f32[2,16,128], index: 5, kind: output, shape index: {}]  }
   0x1   :  { %12 = vsyncpa [#allocation4 + $0x1], 0 }
   0x2   :  { %13 = vsyncpa [#allocation7], 0 }
   0x3   :  { %14 = vsyncpa [#allocation5], 0 }
   0x4   :  { %16 = vsyncpa [#allocation5 + $0x1], 0  ;;  %s1413_s18 = smov 0   ;;  %s1415_s19 = smov 0  }
   0x5   :  { %s1417_s20 = smov 0   ;;  %s1419_s21 = smov 0  }
   0x6   :  { %s1421_s22 = smov 0   ;;  %s1423_s23 = smov 0  }
   0x7 LB: > { %s923_s24 = sadd.s32 4294967295, %s1366_s23   ;;  %s924_s25 = sadd.s32 4294967294, %s1366_s23   ;;  %s1366_s23 = sphi %s1423_s23, %s22_s23   ;;  %s1362_s22 = sphi %s1421_s22, %s1748_s22   ;;  %s1358_s21 = sphi %s1419_s21, %s1747_s21   ;;  %s1354_s20 = sphi %s1417_s20, %s1746_s20   ;;  %s1350_s19 = sphi %s1415_s19, %s1745_s19   ;;  %s1346_s18 = sphi %s1413_s18, %s1744_s18  }
   0x8   : > { %p54_p0 = scmp.ne.s32.totalorder %s1350_s19, %s1346_s18  ;;  %p1447_p1 = scmp.eq.s32.totalorder %s923_s24, 0 }
   0x9   : > { %p1451_p2 = scmp.eq.s32.totalorder %s923_s24, 1  ;;  %p170_p3 = scmp.eq.s32.totalorder %s924_s25, 1 }
   0xa   : > { %s1731_s26 = scalar_select %p1447_p1, 1, 0 }
   0xb   : > { %p1457_p4 = por %p1447_p1, %p54_p0  ;;  %p925_p5 = scmp.ge.s32.totalorder %s1366_s23, 1 }
   0xc   : > { %p1462_p6 = por %p170_p3, %p54_p0  ;;  %p177_p7 = scmp.lt.s32.totalorder %s1366_s23, 3 }
   0xd   : > { %s1733_s28 = scalar_select %p1457_p4, 1, 0 }
   0xe   : > { %s1734_s29 = scalar_select %p1462_p6, 1, 0 }
   0xf   : > { %p1467_p8 = pnand %p925_p5, %p177_p7  ;;  %s1368_s6 = smov [#allocation6]  }
  0x10   : > { %s189_s7 = sshll.u32 %s1368_s6, 4  ;;  %s1369_s9 = smov [#allocation8]   ;;  %s1471_s7 = int_to_ptr.vmem [resolvable:$true] %s189_s7 }
  0x11   : > { %p1064_p9 = pneg %p1467_p8  ;;  %s205_s10 = sshll.u32 %s1369_s9, 4  ;;  %s1482_s10 = int_to_ptr.vmem [resolvable:$true] %s205_s10 }
  0x12   : > { %s1194_s13 = scalar_lea.hbm %s1722_s1, 3072 }
  0x13   : > { %p1478_p11 = pnand %p1064_p9, %p1447_p1  ;;  %p1195_p12 = scmp.ne.s32.totalorder %s1722_s1, %s1194_s13 }
  0x14   : > { %p1201_p5 = scmp.lt.u32.totalorder %s1194_s13, %s1722_s1 }
  0x15   : > { %p1196_p13 = pneg %p1478_p11 }
  0x17   : > { %p1197_p0 = pnand %p1196_p13, %p1195_p12 }
  0x19   : > { %p1198_p3 = pneg %p1197_p0 }
  0x1b   : > { %p1203_p7 = pnand %p1201_p5, %p1198_p3 }
  0x1d   : > { %1206 = shalt.err (!%p1203_p7)
}
  0x1e   : > { %s1207_s24 = scalar_lea.vmem %s1471_s7, 3072  ;;  %p1215_p1 = scmp.lt.s32.totalorder %s1471_s7, %s1471_s7 }
  0x1f   : > { %p1208_p9 = scmp.ne.s32.totalorder %s1471_s7, %s1207_s24  ;;  %p1216_p12 = scmp.lt.s32.totalorder %s1207_s24, %s1207_s24 }
  0x21   : > { %p1210_p10 = pnand %p1208_p9, %p1196_p13  ;;  %p1217_p0 = por %p1216_p12, %p1215_p1 }
  0x23   : > { %p1211_p6 = pneg %p1210_p10 }
  0x25   : > { %p1218_p4 = pnand %p1217_p0, %p1211_p6 }
  0x27   : > { %1221 = shalt.err (!%p1218_p4)
}
  0x28   : > { %s1370_s25 = smov 192   ;;  %s1371_s6 = smov 12  }
  0x29   : > { %1067 = dma.hbm_to_vmem [thread:$0]  (!%p1478_p11), %s1722_s1, 3072, %s1471_s7, [#allocation7], %s1370_s25, %s1370_s25, %s1371_s6  }
  0x2a   : > { %s1222_s14 = scalar_lea.hbm %s1724_s3, 1024 }
  0x2b   : > { %p1223_p1 = scmp.ne.s32.totalorder %s1724_s3, %s1222_s14  ;;  %p1229_p10 = scmp.lt.u32.totalorder %s1222_s14, %s1724_s3 }
  0x2d   : > { %p1225_p4 = pnand %p1223_p1, %p1196_p13 }
  0x2f   : > { %p1226_p6 = pneg %p1225_p4 }
  0x31   : > { %p1231_p3 = pnand %p1229_p10, %p1226_p6 }
  0x33   : > { %1234 = shalt.err (!%p1231_p3)
}
  0x34   : > { %s1235_s7 = scalar_lea.vmem %s1482_s10, 1024  ;;  %p1243_p12 = scmp.lt.s32.totalorder %s1482_s10, %s1482_s10 }
  0x35   : > { %p1236_p5 = scmp.ne.s32.totalorder %s1482_s10, %s1235_s7  ;;  %p1244_p0 = scmp.lt.s32.totalorder %s1235_s7, %s1235_s7 }
  0x37   : > { %p1238_p7 = pnand %p1236_p5, %p1196_p13  ;;  %p1245_p1 = por %p1244_p0, %p1243_p12 }
  0x39   : > { %p1239_p9 = pneg %p1238_p7 }
  0x3b   : > { %p1246_p4 = pnand %p1245_p1, %p1239_p9 }
  0x3d   : > { %1249 = shalt.err (!%p1246_p4)
}
  0x3e   : > { %s1372_s25 = smov 64   ;;  %s1373_s6 = smov 4  }
  0x3f   : > { %1070 = dma.hbm_to_vmem [thread:$0]  (!%p1478_p11), %s1724_s3, 1024, %s1482_s10, [#allocation7], %s1372_s25, %s1372_s25, %s1373_s6  }
  0x40   : > { %s34_s12 = sadd.s32 1, %s1362_s22  ;;  %s41_s13 = sadd.s32 1, %s1354_s20 }
  0x41   : > { %p36_p13 = scmp.ge.s32.totalorder %s34_s12, 2  ;;  %p48_p6 = scmp.ne.s32.totalorder %s1354_s20, %s1350_s19 }
  0x42   : > { %p49_p10 = scmp.eq.s32.totalorder %s1366_s23, 0  ;;  %p1081_p3 = scmp.lt.s32.totalorder %s1366_s23, 2 }
  0x43   : > { %s1750_s12 = smov (%p36_p13, %s34_s12), 0  ;;  %p1546_p7 = por %p1451_p2, %p48_p6 }
  0x44   : > { %p50_p5 = por %p49_p10, %p48_p6  ;;  %s38_s8 = ssub.s32 %s1362_s22, %s1750_s12 }
  0x45   : > { %s1737_s14 = scalar_select %p1546_p7, 1, 0 }
  0x46   : > { %s222_s15 = sand.u32 1, %s1354_s20   ;;  %p39_p9 = scmp.eq.s32.totalorder %s38_s8, 0 }
  0x47   : > { %s929_s10 = sshll.u32 %s222_s15, 4  ;;  %s976_s16 = sshll.u32 %s1362_s22, 8 }
  0x48   : > { %s1555_s17 = scalar_select %p39_p9, %s1354_s20, %s41_s13  }
  0x49   : > { %s1560_s25 = scalar_lea.hbm %s1721_s0, %s976_s16  ;;  %s226_s27 = scalar_lea.vmem [#allocation3], %s929_s10 }
  0x4a   : > { %s233_s6 = sshll.u32 %s226_s27, 4  ;;  %p1564_p2 = pnand %p1081_p3, %p50_p5  ;;  %s1568_s6 = int_to_ptr.vmem [resolvable:$true] %s233_s6 }
  0x4b   : > { %s1570_s11 = scalar_lea.sflag [#allocation4], %s222_s15  ;;  %s1250_s13 = scalar_lea.hbm %s1560_s25, 256 }
  0x4c   : > { %p1251_p11 = scmp.ne.s32.totalorder %s1560_s25, %s1250_s13  ;;  %p1252_p12 = pneg %p1564_p2 }
  0x4d   : > { %s1255_s16 = scalar_lea.hbm %s1721_s0, 512  ;;  %p1256_p4 = scmp.lt.u32.totalorder %s1560_s25, %s1721_s0 }
  0x4e   : > { %p1253_p0 = pnand %p1252_p12, %p1251_p11  ;;  %p1257_p13 = scmp.lt.u32.totalorder %s1255_s16, %s1250_s13 }
  0x4f   : > { %p1259_p10 = scmp.lt.u32.totalorder %s1250_s13, %s1560_s25 }
  0x50   : > { %p1254_p1 = pneg %p1253_p0  ;;  %p1258_p6 = por %p1257_p13, %p1256_p4 }
  0x52   : > { %p1260_p3 = por %p1259_p10, %p1258_p6 }
  0x54   : > { %p1261_p5 = pnand %p1260_p3, %p1254_p1 }
  0x56   : > { %1264 = shalt.err (!%p1261_p5)
}
  0x57   : > { %s1265_s15 = scalar_lea.vmem %s1568_s6, 256  ;;  %s1374_s27 = smov [#allocation3]  }
  0x58   : > { %p1266_p9 = scmp.ne.s32.totalorder %s1568_s6, %s1265_s15  ;;  %s1270_s8 = sshll.u32 %s1374_s27, 4  ;;  %s1271_s8 = int_to_ptr.vmem [resolvable:$false] %s1270_s8 }
  0x59   : > { %s1272_s10 = scalar_lea.vmem %s1271_s8, 512  ;;  %p1273_p7 = scmp.lt.s32.totalorder %s1568_s6, %s1271_s8 }
  0x5a   : > { %p1268_p11 = pnand %p1266_p9, %p1252_p12  ;;  %p1274_p4 = scmp.lt.s32.totalorder %s1272_s10, %s1265_s15 }
  0x5c   : > { %p1269_p0 = pneg %p1268_p11  ;;  %p1275_p13 = por %p1274_p4, %p1273_p7 }
  0x5e   : > { %p1276_p6 = pnand %p1275_p13, %p1269_p0 }
  0x60   : > { %1279 = shalt.err (!%p1276_p6)
}
  0x61   : > { %s1375_s13 = smov 128   ;;  %s1376_s16 = smov 8  }
  0x62   : > { %1074 = dma.hbm_to_vmem [thread:$0]  (!%p1564_p2), %s1560_s25, 256, %s1568_s6, %s1570_s11, %s1375_s13, %s1375_s13, %s1376_s16  }
  0x63   : > { %245 = sbr.rel (%p1467_p8) target bundleno = 1351 (0x547), region = 40  ;;  %s1601_s24 = sand.u32 (!%p1467_p8), 1, %s1350_s19  }
  0x64   : > { %s933_s7 = sshll.u32 (!%p1467_p8), %s1601_s24, 4  ;;  %s248_s15 = scalar_lea.sflag (!%p1467_p8), [#allocation4], %s1601_s24 }
  0x65   : > { %s1607_s27 = scalar_lea.vmem (!%p1467_p8), [#allocation3], %s933_s7  ;;  %p1739_p7 = scmp.ne.s32.totalorder (!%p1467_p8), %s1733_s28, 0 }
  0x6a   : > { %1333 = dma.done.wait (%p1739_p7), %s248_s15, 256  }
  0x6b   : > { %1335 = vsyncadd (%p1739_p7), %s248_s15, 4294967040  ;;  %p1740_p2 = scmp.ne.s32.totalorder %s1731_s26, 0 }
  0x6d   : > { %1337 = dma.done.wait (%p1740_p2), [#allocation7], 4096  }
  0x6e   : > { %1339 = vsyncadd (%p1740_p2), [#allocation7], 4294963200  ;;  %v1377_v0 = vmov 0   ;;  %v1378_v1 = vmov 0.0   ;;  %v1146_v2 = vld [vmem:[#allocation6 + $0x4] ss:$12 sps:$4 sm:$0xff]   ;;  %v329_v29 = vlaneseq }
  0x6f   : > { %504 = vmatprep.mubr.bf16.mxu0 %v1377_v0  ;;  %1000 = vmatprep.subr.bf16.mxu1 %v1378_v1  ;;  %v1148_v3 = vld [vmem:[#allocation6] ss:$12 sps:$4 sm:$0xff]   ;;  %v1149_v4 = vld [vmem:[#allocation6 + $0x1c] ss:$12 sps:$4 sm:$0xff]   ;;  %v1151_v5 = vld [vmem:[#allocation6 + $0x18] ss:$12 sps:$4 sm:$0xff]  }
  0x70   : > { %472 = vmatprep.subr.bf16.mxu0 %v1146_v2  ;;  %v1152_v6 = vld [vmem:[#allocation6 + $0x34] ss:$12 sps:$4 sm:$0xff]   ;;  %v1154_v7 = vld [vmem:[#allocation6 + $0x30] ss:$12 sps:$4 sm:$0xff]   ;;  %v1155_v8 = vld [vmem:[#allocation6 + $0x4c] ss:$12 sps:$4 sm:$0xff]  }
  0x71   : > { %473 = vmatpush1.bf16.msra.mxu0 %v1148_v3  ;;  %v1157_v9 = vld [vmem:[#allocation6 + $0x48] ss:$12 sps:$4 sm:$0xff]   ;;  %v1158_v10 = vld [vmem:[#allocation6 + $0x64] ss:$12 sps:$4 sm:$0xff]   ;;  %v1171_v12 = vld [vmem:[#allocation6 + $0x20] ss:$12 sps:$4 sm:$0xff]  }
  0x72   : > { %474 = vmatprep.subr.bf16.mxu0 %v1149_v4  ;;  %v1170_v11 = vld [vmem:[#allocation6 + $0x8] ss:$12 sps:$4 sm:$0xff]   ;;  %v1160_v13 = vld [vmem:[#allocation6 + $0x60] ss:$12 sps:$4 sm:$0xff]   ;;  %v1172_v15 = vld [vmem:[#allocation6 + $0x38] ss:$12 sps:$4 sm:$0xff]  }
  0x73   : > { %1001 = vmatpush3.bf16.msra.mxu1 %v1170_v11  ;;  %v1161_v14 = vld [vmem:[#allocation6 + $0x7c] ss:$12 sps:$4 sm:$0xff]   ;;  %v1163_v16 = vld [vmem:[#allocation6 + $0x78] ss:$12 sps:$4 sm:$0xff]   ;;  %v1164_v17 = vld [vmem:[#allocation6 + $0x94] ss:$12 sps:$4 sm:$0xff]  }
  0x74   : > { %1002 = vmatprep.subr.bf16.mxu1 %v1378_v1  ;;  %v1173_v18 = vld [vmem:[#allocation6 + $0x50] ss:$12 sps:$4 sm:$0xff]   ;;  %v1167_v20 = vld [vmem:[#allocation6 + $0xac] ss:$12 sps:$4 sm:$0xff]   ;;  %v1174_v21 = vld [vmem:[#allocation6 + $0x68] ss:$12 sps:$4 sm:$0xff]  }
  0x75   : > { %475 = vmatpush1.bf16.msra.mxu0 %v1151_v5  ;;  %v1166_v19 = vld [vmem:[#allocation6 + $0x90] ss:$12 sps:$4 sm:$0xff]   ;;  %v1169_v22 = vld [vmem:[#allocation6 + $0xa8] ss:$12 sps:$4 sm:$0xff]   ;;  %v1175_v26 = vld [vmem:[#allocation6 + $0x80] ss:$12 sps:$4 sm:$0xff]  }
  0x76   : > { %476 = vmatprep.subr.bf16.mxu0 %v1152_v6  ;;  %v1622_v23 = vld [vmem:[%s1607_s27] sm:$0xff]  ;;  %v1625_v24 = vld [vmem:[%s1607_s27 + $0x8] sm:$0xff]  ;;  %vm1379_vm0 = vmmov 0   ;;  %v330_v30 = vshrl.u32 %v329_v29, 7  ;;  %vm612_vm1 = vcmask 130048   ;;  %s285_s6 = scalar_lea.vmem [#allocation9], %s933_s7 }
  0x77   : > { %1003 = vmatpush3.bf16.msra.mxu1 %v1171_v12  ;;  %v294_v25 = vpack.c.bf16 %v1625_v24, %v1622_v23  ;;  %v1176_v27 = vld [vmem:[#allocation6 + $0x98] ss:$12 sps:$4 sm:$0xff]   ;;  %v1177_v28 = vld [vmem:[#allocation6 + $0xb0] ss:$12 sps:$4 sm:$0xff]   ;;  %1016 = vmatprep.mubr.msk.bf16.mxu1 %vm1379_vm0, %v1378_v1  ;;  %v327_v32 = vld [vmem:[%s1723_s2] sm:$0x7] }
  0x78   : > { %1004 = vmatprep.subr.bf16.mxu1 %v1378_v1  ;;  %v331_v31 = vsub.s32 0, %v330_v30  ;;  %v335_v33 = vsub.s32 1, %v330_v30  ;;  %v339_v46 = vsub.s32 2, %v330_v30  ;;  %v1181_v11 = vld [vmem:[#allocation8 + $0x18] sm:$0xff]   ;;  %v1182_v12 = vld [vmem:[#allocation8 + $0x20] sm:$0xff]   ;;  %s816_s9 = sshll.u32 %s285_s6, 4  ;;  %s1666_s9 = int_to_ptr.vmem [resolvable:$true] %s816_s9 }
  0x79   : > { %477 = vmatpush1.bf16.msra.mxu0 %v1154_v7  ;;  %v962_v29 = vld [vmem:[%s1725_s4] ss:$0 sm:$0xff]  ;;  %s977_s11 = sshll.u32 %s1358_s21, 8  ;;  %s801_s21 = scalar_lea.sflag [#allocation5], %s1601_s24 }
  0x7a   : > { %478 = vmatprep.subr.bf16.mxu0 %v1155_v8  ;;  %v332_v34 = vrot.slane %v327_v32, %v331_v31  ;;  %v336_v36 = vrot.slane %v327_v32, %v335_v33  ;;  %v340_v47 = vrot.slane %v327_v32, %v339_v46  ;;  %v1178_v8 = vld [vmem:[#allocation8] sm:$0xff]   ;;  %s1671_s13 = scalar_lea.hbm %s1726_s5, %s977_s11  ;;  %s1280_s16 = scalar_lea.vmem %s1666_s9, 256 }
  0x7b   : > { %1005 = vmatpush3.bf16.msra.mxu1 %v1172_v15  ;;  %p1281_p8 = scmp.ne.s32.totalorder %s1666_s9, %s1280_s16  ;;  %p1741_p12 = scmp.ne.s32.totalorder %s1737_s14, 0 }
  0x7c   : > { %1006 = vmatprep.subr.bf16.mxu1 %v1378_v1  ;;  %s1380_s7 = smov [#allocation9]  }
  0x7d   : > { %479 = vmatpush1.bf16.msra.mxu0 %v1157_v9  ;;  %v1179_v9 = vld [vmem:[#allocation8 + $0x8] sm:$0xff]   ;;  %p1282_p1 = pnand %p1281_p8, %p1741_p12  ;;  %s1284_s15 = sshll.u32 %s1380_s7, 4  ;;  %s1285_s15 = int_to_ptr.vmem [resolvable:$false] %s1284_s15 }
  0x7e   : > { %480 = vmatprep.subr.bf16.mxu0 %v1158_v10  ;;  %v1180_v10 = vld [vmem:[#allocation8 + $0x10] sm:$0xff]   ;;  %s1286_s27 = scalar_lea.vmem %s1285_s15, 512  ;;  %p1287_p3 = scmp.lt.s32.totalorder %s1666_s9, %s1285_s15 }
  0x7f   : > { %1007 = vmatpush3.bf16.msra.mxu1 %v1173_v18  ;;  %p1283_p10 = pneg %p1282_p1  ;;  %p1288_p5 = scmp.lt.s32.totalorder %s1286_s27, %s1280_s16 }
  0x80   : > { %1008 = vmatprep.subr.bf16.mxu1 %v1378_v1 }
  0x81   : > { %481 = vmatpush1.bf16.msra.mxu0 %v1160_v13  ;;  %v1183_v13 = vld [vmem:[#allocation8 + $0x28] sm:$0xff]   ;;  %p1289_p9 = por %p1288_p5, %p1287_p3 }
  0x82   : > { %482 = vmatprep.subr.bf16.mxu0 %v1161_v14  ;;  %v1184_v14 = vld [vmem:[#allocation8 + $0x30] sm:$0xff]  }
  0x83   : > { %1009 = vmatpush3.bf16.msra.mxu1 %v1174_v21  ;;  %p1290_p11 = pnand %p1289_p9, %p1283_p10 }
  0x84   : > { %1010 = vmatprep.subr.bf16.mxu1 %v1378_v1 }
  0x85   : > { %483 = vmatpush1.bf16.msra.mxu0 %v1163_v16 }
  0x86   : > { %484 = vmatprep.subr.bf16.mxu0 %v1164_v17 }
  0x87   : > { %1011 = vmatpush3.bf16.msra.mxu1 %v1175_v26 }
  0x88   : > { %1012 = vmatprep.subr.bf16.mxu1 %v1378_v1 }
  0x89   : > { %485 = vmatpush1.bf16.msra.mxu0 %v1166_v19 }
  0x8a   : > { %486 = vmatprep.subr.bf16.mxu0 %v1167_v20 }
  0x8b   : > { %1013 = vmatpush3.bf16.msra.mxu1 %v1176_v27 }
  0x8c   : > { %1014 = vmatprep.subr.bf16.mxu1 %v1378_v1 }
  0x8d   : > { %487 = vmatpush1.bf16.msra.mxu0 %v1169_v22  ;;  %v1185_v22 = vld [vmem:[#allocation8 + $0x38] sm:$0xff]  }
  0x8e   : > { %1032 = vmatprep.subr.bf16.mxu0 %v1378_v1 }
  0x8f   : > { %1015 = vmatpush3.bf16.msra.mxu1 %v1177_v28 }
  0x90   : > { %505 = vmatmul.mubr.bf16.vlgmr.msra.gmra.mrb[0].mxu0 %v294_v25  ;;  %1020 = vmatprep.subr.bf16.mxu1 %v1378_v1 }
  0x91   : > { %1048 = vmatprep.mubr.msk.bf16.mxu0 %vm1379_vm0, %v1378_v1  ;;  %1033 = vmatpush3.bf16.msra.mxu0 %v1178_v8 }
  0x92   : > { %1017 = vmatmul.mubr.bf16.vlgmr.msra.gmra.mrb[0].mxu1 %v294_v25  ;;  %1034 = vmatprep.subr.bf16.mxu0 %v1378_v1 }
  0x93   : > { %1022 = vmatprep.mubr.msk.bf16.mxu1 %vm1379_vm0, %v1378_v1 }
  0x95   : > { %1035 = vmatpush3.bf16.msra.mxu0 %v1179_v9 }
  0x96   : > { %1036 = vmatprep.subr.bf16.mxu0 %v1378_v1 }
  0x99   : > { %1037 = vmatpush3.bf16.msra.mxu0 %v1180_v10 }
  0x9a   : > { %1038 = vmatprep.subr.bf16.mxu0 %v1378_v1 }
  0x9d   : > { %1039 = vmatpush3.bf16.msra.mxu0 %v1181_v11 }
  0x9e   : > { %1040 = vmatprep.subr.bf16.mxu0 %v1378_v1 }
  0xa1   : > { %1041 = vmatpush3.bf16.msra.mxu0 %v1182_v12 }
  0xa2   : > { %1042 = vmatprep.subr.bf16.mxu0 %v1378_v1 }
  0xa5   : > { %1043 = vmatpush3.bf16.msra.mxu0 %v1183_v13 }
  0xa6   : > { %1044 = vmatprep.subr.bf16.mxu0 %v1378_v1 }
  0xa9   : > { %1045 = vmatpush3.bf16.msra.mxu0 %v1184_v14 }
  0xaa   : > { %1046 = vmatprep.subr.bf16.mxu0 %v1378_v1 }
  0xad   : > { %1047 = vmatpush3.bf16.msra.mxu0 %v1185_v22 }
 0x163   : > { %v506_v35 = vpop.f32.mrb[0].mxu0 }
 0x164   : > { %v508_v37 = vpop.f32.mrb[1].mxu0  ;;  %v507_v39 = vadd.f32 %v506_v35, %v332_v34 }
 0x165   : > { %v510_v38 = vpop.f32.mrb[2].mxu0  ;;  %v509_v42 = vadd.f32 %v508_v37, %v336_v36  ;;  %v549_v48 = vpop.f32.mrb[0].mxu1 }
 0x166   : > { %v511_v40 = vadd.f32 %v510_v38, %v332_v34  ;;  %v512_v41 = vpop.f32.mrb[3].mxu0  ;;  %v550_v49 = vadd.f32 %v549_v48, %v340_v47  ;;  %v1018_v50 = vpop.f32.mrb[1].mxu1 }
 0x167   : > { %v513_v43 = vadd.f32 %v512_v41, %v336_v36  ;;  %v552_v51 = vpop.f32.mrb[2].mxu1 }
 0x168   : > { %v556_v44 = vpack.c.bf16 %v511_v40, %v507_v39  ;;  %v553_v52 = vadd.f32 %v552_v51, %v340_v47  ;;  %v1019_v53 = vpop.f32.mrb[3].mxu1 }
 0x169   : > { %v557_v45 = vpack.c.bf16 %v513_v43, %v509_v42 }
 0x16a   : > { %v558_v54 = vpack.c.bf16 %v553_v52, %v550_v49 }
 0x16b   : > { %1021 = vmatpush3.bf16.xpose.msra.mxu1 %v557_v45 }
 0x16c   : > { %1026 = vmatprep.subr.bf16.mxu1 %v1378_v1 }
 0x172   : > { %1023 = vmatmul.mubr.bf16.vlgmr.msra.gmra.mrb[4].mxu1 %v556_v44 }
 0x173   : > { %1028 = vmatprep.mubr.msk.bf16.mxu1 %vm1379_vm0, %v1378_v1  ;;  %1027 = vmatpush3.bf16.msra.mxu1 %v558_v54 }
 0x245   : > { %v605_v55 = vpop.f32.mrb[4].mxu1 }
 0x246   : > { %v1024_v56 = vpop.f32.mrb[5].mxu1  ;;  %v613_v57 = vsel %vm612_vm1, %v605_v55, -inf }
 0x247   : > { %614 = vmax.xlane.f32.xlu0 %v613_v57  ;;  %v608_v58 = vpop.f32.mrb[6].mxu1 }
 0x248   : > { %v1025_v59 = vpop.f32.mrb[7].mxu1  ;;  %v616_v60 = vsel %vm612_vm1, %v608_v58, -inf }
 0x24b   : > { %617 = vmax.xlane.f32.xlu0 %v616_v60 }
 0x2d4   : > { %v615_v61 = vpop.xlane.xlu0 %614 }
 0x2d5   : > { %v619_v62 = vsub.f32 %v605_v55, %v615_v61 }
 0x2d7   : > { %v621_v63 = vmul.f32 1.442695, %v619_v62 }
 0x2d8   : > { %v618_v0 = vpop.xlane.xlu0 %617 }
 0x2d9   : > { %1186 = vpow2.f32 %v621_v63  ;;  %v620_v2 = vsub.f32 %v608_v58, %v618_v0 }
 0x2db   : > { %v623_v3 = vmul.f32 1.442695, %v620_v2 }
 0x2dd   : > { %1188 = vpow2.f32 %v623_v3 }
 0x2e3   : > { %v1187_v4 = vpop.eup %1186 }
 0x2e4   : > { %v625_v5 = vsel %vm612_vm1, %v1187_v4, 0.0 }
 0x2e5   : > { %626 = vadd.xlane.f32.xlu1 %v625_v5 }
 0x2e7   : > { %v1189_v6 = vpop.eup %1188 }
 0x2e8   : > { %v628_v7 = vsel %vm612_vm1, %v1189_v6, 0.0 }
 0x2e9   : > { %629 = vadd.xlane.f32.xlu1 %v628_v7 }
 0x372   : > { %v627_v15 = vpop.xlane.xlu1 %626 }
 0x373   : > { %1190 = vrcp.f32 %v627_v15 }
 0x376   : > { %v630_v16 = vpop.xlane.xlu1 %629 }
 0x377   : > { %1192 = vrcp.f32 %v630_v16 }
 0x37d   : > { %v1191_v17 = vpop.eup %1190 }
 0x37e   : > { %v633_v19 = vmul.f32 %v1191_v17, %v1187_v4 }
 0x381   : > { %v1193_v18 = vpop.eup %1192 }
 0x382   : > { %v634_v20 = vmul.f32 %v1193_v18, %v1189_v6 }
 0x384   : > { %v635_v21 = vpack.c.bf16 %v634_v20, %v633_v19 }
 0x386   : > { %1029 = vmatmul.mubr.msk.bf16.vlgmr.msra.gmra.mrb[8].mxu1 %vm612_vm1, %v635_v21 }
 0x459   : > { %v673_v25 = vpop.f32.mrb[8].mxu1 }
 0x45a   : > { %v1030_v26 = vpop.f32.mrb[9].mxu1 }
 0x45b   : > { %v676_v27 = vpop.f32.mrb[10].mxu1 }
 0x45c   : > { %v680_v28 = vpack.c.bf16 %v676_v27, %v673_v25  ;;  %v1031_v1 = vpop.f32.mrb[11].mxu1 }
 0x45e   : > { %1049 = vmatmul.mubr.bf16.vlgmr.msra.gmra.mrb[4].mxu0 %v680_v28 }
 0x531   : > { %v786_v30 = vpop.f32.mrb[4].mxu0 }
 0x532   : > { %v787_v31 = vadd.f32 %v962_v29, %v786_v30  ;;  %v1050_v32 = vpop.f32.mrb[5].mxu0 }
 0x533   : > { %v789_v33 = vpop.f32.mrb[6].mxu0 }
 0x534   : > { %v796_v34 = vadd.f32 %v787_v31, %v1622_v23  ;;  %v790_v35 = vadd.f32 %v962_v29, %v789_v33  ;;  %v1051_v36 = vpop.f32.mrb[7].mxu0 }
 0x536   : > { %798 = vst [vmem:[%s285_s6] sm:$0xff] %v796_v34  ;;  %v797_v37 = vadd.f32 %v790_v35, %v1625_v24 }
 0x538   : > { %799 = vst [vmem:[%s285_s6 + $0x8] sm:$0xff] %v797_v37 }
 0x539   : > { %1293 = shalt.err (!%p1290_p11)
}
 0x53a   : > { %s1294_s26 = scalar_lea.hbm %s1671_s13, 256  ;;  %s1298_s25 = scalar_lea.hbm %s1726_s5, 512 }
 0x53b   : > { %p1295_p0 = scmp.ne.s32.totalorder %s1671_s13, %s1294_s26  ;;  %p1299_p6 = scmp.lt.u32.totalorder %s1671_s13, %s1726_s5 }
 0x53c   : > { %p1300_p7 = scmp.lt.u32.totalorder %s1298_s25, %s1294_s26  ;;  %p1302_p8 = scmp.lt.u32.totalorder %s1294_s26, %s1671_s13 }
 0x53d   : > { %p1296_p4 = pnand %p1295_p0, %p1741_p12 }
 0x53e   : > { %p1301_p2 = por %p1300_p7, %p1299_p6 }
 0x53f   : > { %p1297_p13 = pneg %p1296_p4 }
 0x540   : > { %p1303_p1 = por %p1302_p8, %p1301_p2 }
 0x542   : > { %p1304_p10 = pnand %p1303_p1, %p1297_p13 }
 0x544   : > { %1307 = shalt.err (!%p1304_p10)
}
 0x545   : > { %s1381_s8 = smov 128   ;;  %s1382_s10 = smov 8  }
 0x546   : > { %1062 = dma.vmem_to_hbm [thread:$0]  (%p1741_p12), %s1666_s9, 256, %s1671_s13, %s801_s21, %s1381_s8, %s1381_s8, %s1382_s10  }
 0x547 PF: > { %s831_s16 = sand.u32 1, %s1346_s18   ;;  %p1742_p3 = scmp.ne.s32.totalorder %s1734_s29, 0 }
 0x548   : > { %p1743_p5 = scmp.ge.s32.totalorder %s1366_s23, 2  ;;  %s832_s7 = scalar_lea.sflag [#allocation5], %s831_s16 }
 0x54a   : > { %p1076_p9 = pnand %p1743_p5, %p1742_p3 }
 0x54c   : > { %1341 = dma.done.wait (!%p1076_p9), %s832_s7, 256  }
 0x54d   : > { %1343 = vsyncadd (!%p1076_p9), %s832_s7, 4294967040  ;;  %s22_s23 = sadd.s32 1, %s1366_s23   ;;  %s1744_s18 = smov %s1350_s19 }
 0x54e   : > { %p19_p11 = scmp.ge.s32.totalorder %s22_s23, 4   ;;  %s1745_s19 = smov %s1354_s20 }
 0x54f   : > { %s1746_s20 = smov %s1555_s17  ;;  %s1747_s21 = smov %s1362_s22 }
 0x550   : > { %s1748_s22 = smov %s1750_s12  ;;  %21 = sbr.rel (!%p19_p11) target bundleno = 7 (0x7), region = 99 }
 0x557   :  { %837 = vsyncpa [#allocation4], 1 }
 0x558   :  { %839 = vsyncpa [#allocation4 + $0x1], 1 }
 0x559   :  { %840 = vsyncpa [#allocation7], 1 }
 0x55a   :  { %841 = vsyncpa [#allocation5], 1 }
 0x55b   :  { %843 = vsyncpa [#allocation5 + $0x1], 1 }

</bundles_post_ra>
